<compile_context>
chip_gen: v5e
topology: v5e:2x2
jax: 0.10.0
libtpu: 0.0.40
codegen_flags: <defaults>
</compile_context>

<pallas_src>
import math
import functools

import numpy as np
import jax
import jax.numpy as jnp
from jax.experimental import pallas as pl
from jax.experimental.pallas import tpu as pltpu

# ------------------------- configuration -------------------------
HIDDEN_DIM = 32
NUM_HEADS = 4
HEAD_DIM = HIDDEN_DIM // NUM_HEADS
SEQ_LEN = 8
BATCH = 2
FF_DIM = 4 * HIDDEN_DIM
LN_EPS = 1e-5
NEG_INF = -1e30
QKV_PAD = 128  # lane stride for the padded QKV weight (q at 0, k at 128, v at 256)


# ------------------------- Pallas kernel -------------------------
def attention_block_kernel(
    x_ref,       # (R, E)        flattened (L, N, E); row r = l*N + n
    wqkv_ref,    # (E, 3*128)    padded [Wq*scale | 0 | Wk | 0 | Wv | 0], pre-transposed
    wo_ref,      # (E, E)        out_proj.weight, pre-transposed
    w1_ref,      # (E, 4E)       feed_forward[0].weight, pre-transposed
    w2_ref,      # (4E, E)       feed_forward[2].weight, pre-transposed
    vecs_ref,    # (16, 128)     packed bias/gain vectors (see prepare_params)
    bias_ref,    # (H*R, H*R)    precomputed additive attention mask (head-major)
    out_ref,     # (R, E)
    *, num_heads,
):
    rows, e = x_ref.shape
    nh = num_heads
    hd = e // nh

    x = x_ref[...]                                                # (R, E)

    vecs = vecs_ref[...]
    bq, bk, bv = vecs[0, :e], vecs[1, :e], vecs[2, :e]
    bo = vecs[3, :e]
    b1 = vecs[4, :]
    b2 = vecs[5, :e]
    g1, be1 = vecs[6, :e], vecs[7, :e]
    g2, be2 = vecs[8, :e], vecs[9, :e]

    # ---- QKV projection: one GEMM; q/k/v slices are vreg-aligned (0/128/256) ----
    qkv = jnp.dot(x, wqkv_ref[...], preferred_element_type=jnp.float32)  # (R, 384)
    q = qkv[:, 0:e] + bq                # 1/sqrt(Dh) already folded into Wq / bq
    k = qkv[:, QKV_PAD:QKV_PAD + e] + bk
    v = qkv[:, 2 * QKV_PAD:2 * QKV_PAD + e] + bv

    # ---- fold heads onto the sublane axis (head-major): (R, E) -> (H*R, Dh) ----
    qh = jnp.concatenate([q[:, h * hd:(h + 1) * hd] for h in range(nh)], axis=0)
    kh = jnp.concatenate([k[:, h * hd:(h + 1) * hd] for h in range(nh)], axis=0)
    vh = jnp.concatenate([v[:, h * hd:(h + 1) * hd] for h in range(nh)], axis=0)

    # ---- ONE score matmul for all heads; precomputed mask kills cross-head /
    #      cross-sequence pairs ----
    s = jax.lax.dot_general(qh, kh, (((1,), (1,)), ((), ())),
                            preferred_element_type=jnp.float32)          # (HR, HR)
    s = s + bias_ref[...]

    # softmax over keys (masked entries underflow to exactly 0)
    s = s - jnp.max(s, axis=-1, keepdims=True)
    p = jnp.exp(s)
    p = p / jnp.sum(p, axis=-1, keepdims=True)

    # ---- ONE P@V matmul, then merge heads back to (R, E) ----
    o = jnp.dot(p, vh, preferred_element_type=jnp.float32)               # (HR, Dh)
    attn = jnp.concatenate([o[h * rows:(h + 1) * rows, :] for h in range(nh)],
                           axis=1)                                        # (R, E)

    # ---- output projection ----
    attn = jnp.dot(attn, wo_ref[...], preferred_element_type=jnp.float32) + bo

    # ---- residual + LayerNorm1 ----
    x1 = x + attn
    mu1 = jnp.mean(x1, axis=-1, keepdims=True)
    var1 = jnp.mean((x1 - mu1) ** 2, axis=-1, keepdims=True)
    x1 = (x1 - mu1) * jax.lax.rsqrt(var1 + LN_EPS) * g1 + be1

    # ---- feed-forward: Linear(E,4E) -> ReLU -> Linear(4E,E) ----
    h1 = jnp.dot(x1, w1_ref[...], preferred_element_type=jnp.float32) + b1
    h1 = jnp.maximum(h1, 0.0)
    ff = jnp.dot(h1, w2_ref[...], preferred_element_type=jnp.float32) + b2

    # ---- residual + LayerNorm2 ----
    x2 = x1 + ff
    mu2 = jnp.mean(x2, axis=-1, keepdims=True)
    var2 = jnp.mean((x2 - mu2) ** 2, axis=-1, keepdims=True)
    out_ref[...] = (x2 - mu2) * jax.lax.rsqrt(var2 + LN_EPS) * g2 + be2


# ------------------------- one-time parameter prep (host side) -------------------------
def prepare_params(params):
    """Transpose / scale-fold / pad / pack the PyTorch-layout params once."""
    (wqkv, bqkv, wo, bo, w1, b1, w2, b2, g1, be1, g2, be2) = params
    E, F, H = HIDDEN_DIM, FF_DIM, NUM_HEADS
    hd = E // H
    scale = 1.0 / math.sqrt(hd)

    wqkv = np.asarray(wqkv, np.float32)
    bqkv = np.asarray(bqkv, np.float32)

    wq, wk, wv = wqkv[:E], wqkv[E:2 * E], wqkv[2 * E:]        # PyTorch (out, in)
    bq, bk, bv = bqkv[0, :E], bqkv[0, E:2 * E], bqkv[0, 2 * E:]

    # fold the softmax scale into the query projection
    wq = wq * scale
    bq = bq * scale

    # pre-transpose + lane-pad so q/k/v land at lane offsets 0 / 128 / 256
    wqkv_pad = np.zeros((E, 3 * QKV_PAD), np.float32)
    wqkv_pad[:, 0:E] = wq.T
    wqkv_pad[:, QKV_PAD:QKV_PAD + E] = wk.T
    wqkv_pad[:, 2 * QKV_PAD:2 * QKV_PAD + E] = wv.T

    wo_t = np.asarray(wo, np.float32).T
    w1_t = np.asarray(w1, np.float32).T
    w2_t = np.asarray(w2, np.float32).T

    # pack the 10 small vectors into one (16, 128) slab (rows 10..15 are padding)
    vecs = np.zeros((16, 128), np.float32)
    vecs[0, :E] = bq
    vecs[1, :E] = bk
    vecs[2, :E] = bv
    vecs[3, :E] = np.asarray(bo, np.float32)[0]
    vecs[4, :F] = np.asarray(b1, np.float32)[0]
    vecs[5, :E] = np.asarray(b2, np.float32)[0]
    vecs[6, :E] = np.asarray(g1, np.float32)[0]
    vecs[7, :E] = np.asarray(be1, np.float32)[0]
    vecs[8, :E] = np.asarray(g2, np.float32)[0]
    vecs[9, :E] = np.asarray(be2, np.float32)[0]

    # precomputed additive attention mask for the head-major folded layout:
    # row i = h*R + r, with r = l*N + n  ->  head(i) = i // R, batch(i) = (i % R) % N
    R = SEQ_LEN * BATCH
    idx = np.arange(H * R)
    head = idx // R
    batch = (idx % R) % BATCH
    allowed = (head[:, None] == head[None, :]) & (batch[:, None] == batch[None, :])
    bias = np.where(allowed, 0.0, NEG_INF).astype(np.float32)

    return (jnp.asarray(wqkv_pad), jnp.asarray(wo_t), jnp.asarray(w1_t),
            jnp.asarray(w2_t), jnp.asarray(vecs), jnp.asarray(bias))


# ------------------------- wrapper -------------------------
@jax.jit
def attention_block(x_lne, prepared):
    """x_lne: (L, N, E) float32 (PyTorch MHA default layout) -> (L, N, E)."""
    L, N, E = x_lne.shape
    wqkv_pad, wo_t, w1_t, w2_t, vecs, bias = prepared

    # Flatten (L, N, E) -> (L*N, E): free reshape, row r = l*N + n.
    x2d = x_lne.reshape(L * N, E)

    vm = pl.BlockSpec(memory_space=pltpu.MemorySpace.VMEM)

    out2d = pl.pallas_call(
        functools.partial(attention_block_kernel, num_heads=NUM_HEADS),
        out_shape=jax.ShapeDtypeStruct((L * N, E), jnp.float32),
        in_specs=[vm] * 7,
        out_specs=vm,
    )(x2d, wqkv_pad, wo_t, w1_t, w2_t, vecs, bias)

    return out2d.reshape(L, N, E)


# ------------------------- pure-JAX reference -------------------------
def attention_block_ref(x_lne, params):
    (wqkv, bqkv, wo, bo, w1, b1, w2, b2, g1, be1, g2, be2) = params
    E, H, Dh = HIDDEN_DIM, NUM_HEADS, HEAD_DIM
    x = jnp.transpose(x_lne, (1, 0, 2))  # (N, L, E)

    qkv = x @ wqkv.T + bqkv[0]
    q, k, v = qkv[..., :E], qkv[..., E:2 * E], qkv[..., 2 * E:]

    def split_heads(t):  # (N, L, E) -> (N, H, L, Dh)
        N, L, _ = t.shape
        return t.reshape(N, L, H, Dh).transpose(0, 2, 1, 3)

    qh, kh, vh = split_heads(q), split_heads(k), split_heads(v)
    s = jnp.einsum("nhld,nhmd->nhlm", qh, kh) / math.sqrt(Dh)
    p = jax.nn.softmax(s, axis=-1)
    o = jnp.einsum("nhlm,nhmd->nhld", p, vh)          # (N, H, L, Dh)
    o = o.transpose(0, 2, 1, 3).reshape(*x.shape)     # (N, L, E)
    attn = o @ wo.T + bo[0]

    def ln(t, g, b):
        mu = jnp.mean(t, axis=-1, keepdims=True)
        var = jnp.mean((t - mu) ** 2, axis=-1, keepdims=True)
        return (t - mu) * jax.lax.rsqrt(var + LN_EPS) * g[0] + b[0]

    x1 = ln(x + attn, g1, be1)
    ff = jnp.maximum(x1 @ w1.T + b1[0], 0.0) @ w2.T + b2[0]
    x2 = ln(x1 + ff, g2, be2)
    return jnp.transpose(x2, (1, 0, 2))


# ------------------------- deterministic param init -------------------------
def init_params(key):
    E, F = HIDDEN_DIM, FF_DIM
    keys = jax.random.split(key, 6)
    s = 0.05
    wqkv = s * jax.random.normal(keys[0], (3 * E, E), jnp.float32)
    bqkv = s * jax.random.normal(keys[1], (1, 3 * E), jnp.float32)
    wo = s * jax.random.normal(keys[2], (E, E), jnp.float32)
    bo = jnp.zeros((1, E), jnp.float32)
    w1 = s * jax.random.normal(keys[3], (F, E), jnp.float32)
    b1 = s * jax.random.normal(keys[4], (1, F), jnp.float32)
    w2 = s * jax.random.normal(keys[5], (E, F), jnp.float32)
    b2 = jnp.zeros((1, E), jnp.float32)
    g1 = jnp.ones((1, E), jnp.float32)
    be1 = jnp.zeros((1, E), jnp.float32)
    g2 = jnp.ones((1, E), jnp.float32)
    be2 = jnp.zeros((1, E), jnp.float32)
    return (wqkv, bqkv, wo, bo, w1, b1, w2, b2, g1, be1, g2, be2)


if __name__ == "__main__":
    key = jax.random.PRNGKey(0)
    k_x, k_p = jax.random.split(key)
    # x follows PyTorch nn.MultiheadAttention default layout: (seq, batch, embed)
    x = jax.random.normal(k_x, (SEQ_LEN, BATCH, HIDDEN_DIM), jnp.float32)
    params = init_params(k_p)

    prepared = prepare_params(params)     # one-time host-side prep (not per call)

    out = attention_block(x, prepared)
    out = jax.block_until_ready(out)

    ref = attention_block_ref(x, params)
    assert out.shape == (SEQ_LEN, BATCH, HIDDEN_DIM)
    # Softmax now uses an exact divide; remaining tolerance covers matmul
    # ordering differences and TPU default-precision matmuls in the reference.
    assert jnp.allclose(out, ref, atol=2e-3, rtol=2e-3), "mismatch vs reference"

    print("KERNEL_OK")
</pallas_src>

<mosaic_0001>
module attributes {stable_mosaic.version = 11 : i64} {
  func.func @attention_block_kernel(%arg0: memref<16x32xf32, #tpu.memory_space<vmem>>, %arg1: memref<32x384xf32, #tpu.memory_space<vmem>>, %arg2: memref<32x32xf32, #tpu.memory_space<vmem>>, %arg3: memref<32x128xf32, #tpu.memory_space<vmem>>, %arg4: memref<128x32xf32, #tpu.memory_space<vmem>>, %arg5: memref<16x128xf32, #tpu.memory_space<vmem>>, %arg6: memref<64x64xf32, #tpu.memory_space<vmem>>, %arg7: memref<16x32xf32, #tpu.memory_space<vmem>>) attributes {dimension_semantics = [], scalar_prefetch = 0 : i64, scratch_operands = 0 : i64, tpu.core_type = #tpu.core_type<tc>} {
    %c0 = arith.constant 0 : index
    %c0_0 = arith.constant 0 : index
    %0 = vector.load %arg0[%c0, %c0_0] : memref<16x32xf32, #tpu.memory_space<vmem>>, vector<16x32xf32>
    %c0_1 = arith.constant 0 : index
    %c0_2 = arith.constant 0 : index
    %1 = vector.load %arg5[%c0_1, %c0_2] : memref<16x128xf32, #tpu.memory_space<vmem>>, vector<16x128xf32>
    %2 = vector.extract_strided_slice %1 {offsets = [0, 0], sizes = [1, 32], strides = [1, 1]} : vector<16x128xf32> to vector<1x32xf32>
    %3 = vector.shape_cast %2 : vector<1x32xf32> to vector<32xf32>
    %4 = vector.extract_strided_slice %1 {offsets = [1, 0], sizes = [1, 32], strides = [1, 1]} : vector<16x128xf32> to vector<1x32xf32>
    %5 = vector.shape_cast %4 : vector<1x32xf32> to vector<32xf32>
    %6 = vector.extract_strided_slice %1 {offsets = [2, 0], sizes = [1, 32], strides = [1, 1]} : vector<16x128xf32> to vector<1x32xf32>
    %7 = vector.shape_cast %6 : vector<1x32xf32> to vector<32xf32>
    %8 = vector.extract_strided_slice %1 {offsets = [3, 0], sizes = [1, 32], strides = [1, 1]} : vector<16x128xf32> to vector<1x32xf32>
    %9 = vector.shape_cast %8 : vector<1x32xf32> to vector<32xf32>
    %10 = vector.extract_strided_slice %1 {offsets = [4, 0], sizes = [1, 128], strides = [1, 1]} : vector<16x128xf32> to vector<1x128xf32>
    %11 = vector.shape_cast %10 : vector<1x128xf32> to vector<128xf32>
    %12 = vector.extract_strided_slice %1 {offsets = [5, 0], sizes = [1, 32], strides = [1, 1]} : vector<16x128xf32> to vector<1x32xf32>
    %13 = vector.shape_cast %12 : vector<1x32xf32> to vector<32xf32>
    %14 = vector.extract_strided_slice %1 {offsets = [6, 0], sizes = [1, 32], strides = [1, 1]} : vector<16x128xf32> to vector<1x32xf32>
    %15 = vector.shape_cast %14 : vector<1x32xf32> to vector<32xf32>
    %16 = vector.extract_strided_slice %1 {offsets = [7, 0], sizes = [1, 32], strides = [1, 1]} : vector<16x128xf32> to vector<1x32xf32>
    %17 = vector.shape_cast %16 : vector<1x32xf32> to vector<32xf32>
    %18 = vector.extract_strided_slice %1 {offsets = [8, 0], sizes = [1, 32], strides = [1, 1]} : vector<16x128xf32> to vector<1x32xf32>
    %19 = vector.shape_cast %18 : vector<1x32xf32> to vector<32xf32>
    %20 = vector.extract_strided_slice %1 {offsets = [9, 0], sizes = [1, 32], strides = [1, 1]} : vector<16x128xf32> to vector<1x32xf32>
    %21 = vector.shape_cast %20 : vector<1x32xf32> to vector<32xf32>
    %c0_3 = arith.constant 0 : index
    %c0_4 = arith.constant 0 : index
    %22 = vector.load %arg1[%c0_3, %c0_4] : memref<32x384xf32, #tpu.memory_space<vmem>>, vector<32x384xf32>
    %cst = arith.constant dense<0.000000e+00> : vector<16x384xf32>
    %23 = tpu.matmul %0, %22, %cst {dimension_numbers = #tpu.dot_dimension_numbers<[1], [0], [0], [1], [0, 0, 1, 1], [], []>} : vector<16x32xf32>, vector<32x384xf32>, vector<16x384xf32> -> vector<16x384xf32>
    %24 = vector.extract_strided_slice %23 {offsets = [0, 0], sizes = [16, 32], strides = [1, 1]} : vector<16x384xf32> to vector<16x32xf32>
    %25 = vector.shape_cast %3 : vector<32xf32> to vector<1x32xf32>
    %26 = vector.broadcast %25 : vector<1x32xf32> to vector<16x32xf32>
    %27 = arith.addf %24, %26 : vector<16x32xf32>
    %28 = vector.extract_strided_slice %23 {offsets = [0, 128], sizes = [16, 32], strides = [1, 1]} : vector<16x384xf32> to vector<16x32xf32>
    %29 = vector.shape_cast %5 : vector<32xf32> to vector<1x32xf32>
    %30 = vector.broadcast %29 : vector<1x32xf32> to vector<16x32xf32>
    %31 = arith.addf %28, %30 : vector<16x32xf32>
    %32 = vector.extract_strided_slice %23 {offsets = [0, 256], sizes = [16, 32], strides = [1, 1]} : vector<16x384xf32> to vector<16x32xf32>
    %33 = vector.shape_cast %7 : vector<32xf32> to vector<1x32xf32>
    %34 = vector.broadcast %33 : vector<1x32xf32> to vector<16x32xf32>
    %35 = arith.addf %32, %34 : vector<16x32xf32>
    %36 = vector.extract_strided_slice %27 {offsets = [0, 0], sizes = [16, 8], strides = [1, 1]} : vector<16x32xf32> to vector<16x8xf32>
    %37 = vector.extract_strided_slice %27 {offsets = [0, 8], sizes = [16, 8], strides = [1, 1]} : vector<16x32xf32> to vector<16x8xf32>
    %38 = vector.extract_strided_slice %27 {offsets = [0, 16], sizes = [16, 8], strides = [1, 1]} : vector<16x32xf32> to vector<16x8xf32>
    %39 = vector.extract_strided_slice %27 {offsets = [0, 24], sizes = [16, 8], strides = [1, 1]} : vector<16x32xf32> to vector<16x8xf32>
    %40 = tpu.concatenate %36, %37, %38, %39 in 0 : vector<16x8xf32>, vector<16x8xf32>, vector<16x8xf32>, vector<16x8xf32> -> vector<64x8xf32>
    %41 = vector.extract_strided_slice %31 {offsets = [0, 0], sizes = [16, 8], strides = [1, 1]} : vector<16x32xf32> to vector<16x8xf32>
    %42 = vector.extract_strided_slice %31 {offsets = [0, 8], sizes = [16, 8], strides = [1, 1]} : vector<16x32xf32> to vector<16x8xf32>
    %43 = vector.extract_strided_slice %31 {offsets = [0, 16], sizes = [16, 8], strides = [1, 1]} : vector<16x32xf32> to vector<16x8xf32>
    %44 = vector.extract_strided_slice %31 {offsets = [0, 24], sizes = [16, 8], strides = [1, 1]} : vector<16x32xf32> to vector<16x8xf32>
    %45 = tpu.concatenate %41, %42, %43, %44 in 0 : vector<16x8xf32>, vector<16x8xf32>, vector<16x8xf32>, vector<16x8xf32> -> vector<64x8xf32>
    %46 = vector.extract_strided_slice %35 {offsets = [0, 0], sizes = [16, 8], strides = [1, 1]} : vector<16x32xf32> to vector<16x8xf32>
    %47 = vector.extract_strided_slice %35 {offsets = [0, 8], sizes = [16, 8], strides = [1, 1]} : vector<16x32xf32> to vector<16x8xf32>
    %48 = vector.extract_strided_slice %35 {offsets = [0, 16], sizes = [16, 8], strides = [1, 1]} : vector<16x32xf32> to vector<16x8xf32>
    %49 = vector.extract_strided_slice %35 {offsets = [0, 24], sizes = [16, 8], strides = [1, 1]} : vector<16x32xf32> to vector<16x8xf32>
    %50 = tpu.concatenate %46, %47, %48, %49 in 0 : vector<16x8xf32>, vector<16x8xf32>, vector<16x8xf32>, vector<16x8xf32> -> vector<64x8xf32>
    %cst_5 = arith.constant dense<0.000000e+00> : vector<64x64xf32>
    %51 = tpu.matmul %40, %45, %cst_5 {dimension_numbers = #tpu.dot_dimension_numbers<[1], [1], [0], [0], [0, 0, 1, 0], [], []>} : vector<64x8xf32>, vector<64x8xf32>, vector<64x64xf32> -> vector<64x64xf32>
    %c0_6 = arith.constant 0 : index
    %c0_7 = arith.constant 0 : index
    %52 = vector.load %arg6[%c0_6, %c0_7] : memref<64x64xf32, #tpu.memory_space<vmem>>, vector<64x64xf32>
    %53 = arith.addf %51, %52 : vector<64x64xf32>
    %cst_8 = arith.constant dense<0xFF800000> : vector<64xf32>
    %54 = vector.multi_reduction <maximumf>, %53, %cst_8 [1] : vector<64x64xf32> to vector<64xf32>
    %55 = vector.shape_cast %54 : vector<64xf32> to vector<64x1xf32>
    %56 = vector.broadcast %55 : vector<64x1xf32> to vector<64x64xf32>
    %57 = arith.subf %53, %56 : vector<64x64xf32>
    %58 = math.exp %57 : vector<64x64xf32>
    %cst_9 = arith.constant dense<0.000000e+00> : vector<64xf32>
    %59 = vector.multi_reduction <add>, %58, %cst_9 [1] : vector<64x64xf32> to vector<64xf32>
    %60 = vector.shape_cast %59 : vector<64xf32> to vector<64x1xf32>
    %61 = vector.broadcast %60 : vector<64x1xf32> to vector<64x64xf32>
    %62 = arith.divf %58, %61 : vector<64x64xf32>
    %cst_10 = arith.constant dense<0.000000e+00> : vector<64x8xf32>
    %63 = tpu.matmul %62, %50, %cst_10 {dimension_numbers = #tpu.dot_dimension_numbers<[1], [0], [0], [1], [0, 0, 1, 1], [], []>} : vector<64x64xf32>, vector<64x8xf32>, vector<64x8xf32> -> vector<64x8xf32>
    %64 = vector.extract_strided_slice %63 {offsets = [0, 0], sizes = [16, 8], strides = [1, 1]} : vector<64x8xf32> to vector<16x8xf32>
    %65 = vector.extract_strided_slice %63 {offsets = [16, 0], sizes = [16, 8], strides = [1, 1]} : vector<64x8xf32> to vector<16x8xf32>
    %66 = vector.extract_strided_slice %63 {offsets = [32, 0], sizes = [16, 8], strides = [1, 1]} : vector<64x8xf32> to vector<16x8xf32>
    %67 = vector.extract_strided_slice %63 {offsets = [48, 0], sizes = [16, 8], strides = [1, 1]} : vector<64x8xf32> to vector<16x8xf32>
    %68 = tpu.concatenate %64, %65, %66, %67 in 1 : vector<16x8xf32>, vector<16x8xf32>, vector<16x8xf32>, vector<16x8xf32> -> vector<16x32xf32>
    %c0_11 = arith.constant 0 : index
    %c0_12 = arith.constant 0 : index
    %69 = vector.load %arg2[%c0_11, %c0_12] : memref<32x32xf32, #tpu.memory_space<vmem>>, vector<32x32xf32>
    %cst_13 = arith.constant dense<0.000000e+00> : vector<16x32xf32>
    %70 = tpu.matmul %68, %69, %cst_13 {dimension_numbers = #tpu.dot_dimension_numbers<[1], [0], [0], [1], [0, 0, 1, 1], [], []>} : vector<16x32xf32>, vector<32x32xf32>, vector<16x32xf32> -> vector<16x32xf32>
    %71 = vector.shape_cast %9 : vector<32xf32> to vector<1x32xf32>
    %72 = vector.broadcast %71 : vector<1x32xf32> to vector<16x32xf32>
    %73 = arith.addf %70, %72 : vector<16x32xf32>
    %74 = arith.addf %0, %73 : vector<16x32xf32>
    %cst_14 = arith.constant dense<0.000000e+00> : vector<16xf32>
    %75 = vector.multi_reduction <add>, %74, %cst_14 [1] : vector<16x32xf32> to vector<16xf32>
    %76 = vector.shape_cast %75 : vector<16xf32> to vector<16x1xf32>
    %cst_15 = arith.constant 3.200000e+01 : f32
    %77 = vector.broadcast %cst_15 : f32 to vector<16x1xf32>
    %78 = arith.divf %76, %77 : vector<16x1xf32>
    %79 = vector.broadcast %78 : vector<16x1xf32> to vector<16x32xf32>
    %80 = arith.subf %74, %79 : vector<16x32xf32>
    %81 = arith.mulf %80, %80 : vector<16x32xf32>
    %cst_16 = arith.constant dense<0.000000e+00> : vector<16xf32>
    %82 = vector.multi_reduction <add>, %81, %cst_16 [1] : vector<16x32xf32> to vector<16xf32>
    %83 = vector.shape_cast %82 : vector<16xf32> to vector<16x1xf32>
    %cst_17 = arith.constant 3.200000e+01 : f32
    %84 = vector.broadcast %cst_17 : f32 to vector<16x1xf32>
    %85 = arith.divf %83, %84 : vector<16x1xf32>
    %86 = vector.broadcast %78 : vector<16x1xf32> to vector<16x32xf32>
    %87 = arith.subf %74, %86 : vector<16x32xf32>
    %cst_18 = arith.constant 9.99999974E-6 : f32
    %88 = vector.broadcast %cst_18 : f32 to vector<16x1xf32>
    %89 = arith.addf %85, %88 : vector<16x1xf32>
    %90 = math.rsqrt %89 : vector<16x1xf32>
    %91 = vector.broadcast %90 : vector<16x1xf32> to vector<16x32xf32>
    %92 = arith.mulf %87, %91 : vector<16x32xf32>
    %93 = vector.shape_cast %15 : vector<32xf32> to vector<1x32xf32>
    %94 = vector.broadcast %93 : vector<1x32xf32> to vector<16x32xf32>
    %95 = arith.mulf %92, %94 : vector<16x32xf32>
    %96 = vector.shape_cast %17 : vector<32xf32> to vector<1x32xf32>
    %97 = vector.broadcast %96 : vector<1x32xf32> to vector<16x32xf32>
    %98 = arith.addf %95, %97 : vector<16x32xf32>
    %c0_19 = arith.constant 0 : index
    %c0_20 = arith.constant 0 : index
    %99 = vector.load %arg3[%c0_19, %c0_20] : memref<32x128xf32, #tpu.memory_space<vmem>>, vector<32x128xf32>
    %cst_21 = arith.constant dense<0.000000e+00> : vector<16x128xf32>
    %100 = tpu.matmul %98, %99, %cst_21 {dimension_numbers = #tpu.dot_dimension_numbers<[1], [0], [0], [1], [0, 0, 1, 1], [], []>} : vector<16x32xf32>, vector<32x128xf32>, vector<16x128xf32> -> vector<16x128xf32>
    %101 = vector.shape_cast %11 : vector<128xf32> to vector<1x128xf32>
    %102 = vector.broadcast %101 : vector<1x128xf32> to vector<16x128xf32>
    %103 = arith.addf %100, %102 : vector<16x128xf32>
    %cst_22 = arith.constant 0.000000e+00 : f32
    %104 = vector.broadcast %cst_22 : f32 to vector<16x128xf32>
    %105 = arith.maximumf %103, %104 : vector<16x128xf32>
    %c0_23 = arith.constant 0 : index
    %c0_24 = arith.constant 0 : index
    %106 = vector.load %arg4[%c0_23, %c0_24] : memref<128x32xf32, #tpu.memory_space<vmem>>, vector<128x32xf32>
    %cst_25 = arith.constant dense<0.000000e+00> : vector<16x32xf32>
    %107 = tpu.matmul %105, %106, %cst_25 {dimension_numbers = #tpu.dot_dimension_numbers<[1], [0], [0], [1], [0, 0, 1, 1], [], []>} : vector<16x128xf32>, vector<128x32xf32>, vector<16x32xf32> -> vector<16x32xf32>
    %108 = vector.shape_cast %13 : vector<32xf32> to vector<1x32xf32>
    %109 = vector.broadcast %108 : vector<1x32xf32> to vector<16x32xf32>
    %110 = arith.addf %107, %109 : vector<16x32xf32>
    %111 = arith.addf %98, %110 : vector<16x32xf32>
    %cst_26 = arith.constant dense<0.000000e+00> : vector<16xf32>
    %112 = vector.multi_reduction <add>, %111, %cst_26 [1] : vector<16x32xf32> to vector<16xf32>
    %113 = vector.shape_cast %112 : vector<16xf32> to vector<16x1xf32>
    %cst_27 = arith.constant 3.200000e+01 : f32
    %114 = vector.broadcast %cst_27 : f32 to vector<16x1xf32>
    %115 = arith.divf %113, %114 : vector<16x1xf32>
    %116 = vector.broadcast %115 : vector<16x1xf32> to vector<16x32xf32>
    %117 = arith.subf %111, %116 : vector<16x32xf32>
    %118 = arith.mulf %117, %117 : vector<16x32xf32>
    %cst_28 = arith.constant dense<0.000000e+00> : vector<16xf32>
    %119 = vector.multi_reduction <add>, %118, %cst_28 [1] : vector<16x32xf32> to vector<16xf32>
    %120 = vector.shape_cast %119 : vector<16xf32> to vector<16x1xf32>
    %cst_29 = arith.constant 3.200000e+01 : f32
    %121 = vector.broadcast %cst_29 : f32 to vector<16x1xf32>
    %122 = arith.divf %120, %121 : vector<16x1xf32>
    %123 = vector.broadcast %115 : vector<16x1xf32> to vector<16x32xf32>
    %124 = arith.subf %111, %123 : vector<16x32xf32>
    %cst_30 = arith.constant 9.99999974E-6 : f32
    %125 = vector.broadcast %cst_30 : f32 to vector<16x1xf32>
    %126 = arith.addf %122, %125 : vector<16x1xf32>
    %127 = math.rsqrt %126 : vector<16x1xf32>
    %128 = vector.broadcast %127 : vector<16x1xf32> to vector<16x32xf32>
    %129 = arith.mulf %124, %128 : vector<16x32xf32>
    %130 = vector.shape_cast %19 : vector<32xf32> to vector<1x32xf32>
    %131 = vector.broadcast %130 : vector<1x32xf32> to vector<16x32xf32>
    %132 = arith.mulf %129, %131 : vector<16x32xf32>
    %133 = vector.shape_cast %21 : vector<32xf32> to vector<1x32xf32>
    %134 = vector.broadcast %133 : vector<1x32xf32> to vector<16x32xf32>
    %135 = arith.addf %132, %134 : vector<16x32xf32>
    %c0_31 = arith.constant 0 : index
    %c0_32 = arith.constant 0 : index
    %136 = vector.load %arg7[%c0_31, %c0_32] : memref<16x32xf32, #tpu.memory_space<vmem>>, vector<16x32xf32>
    tpu.vector_store %arg7[%c0_31, %c0_32], %135 {strides = array<i32>} : memref<16x32xf32, #tpu.memory_space<vmem>>, vector<16x32xf32>,
    return
  }
}

</mosaic_0001>

<bundles_post_ra>
// kernel: attention_block.1
= control target key start
LH: loop header
LB: loop body
LE: loop exit
PB: predicated region body
PF: predicated region fallthrough
CT: control target
= control target key end

     0   :  { %12 = vsyncpa [#allocation3], 0  ;;  %s1488_s0 = inlined_call_operand.hbm [shape: f32[16,32], index: 0, kind: input, shape index: {}]   ;;  %s1489_s1 = inlined_call_operand.vmem [shape: f32[32,384], index: 1, kind: input, shape index: {}]   ;;  %s1490_s2 = inlined_call_operand.hbm [shape: f32[32,32], index: 2, kind: input, shape index: {}]   ;;  %s1491_s3 = inlined_call_operand.hbm [shape: f32[32,128], index: 3, kind: input, shape index: {}]   ;;  %s1492_s4 = inlined_call_operand.vmem [shape: f32[128,32], index: 4, kind: input, shape index: {}]   ;;  %s1493_s5 = inlined_call_operand.hbm [shape: f32[16,128], index: 5, kind: input, shape index: {}]   ;;  %s1494_s6 = inlined_call_operand.vmem [shape: f32[64,64], index: 6, kind: input, shape index: {}]   ;;  %s1495_s7 = inlined_call_operand.hbm [shape: f32[16,32], index: 7, kind: output, shape index: {}]  }
   0x1   :  { %13 = vsyncpa [#allocation6], 0 }
   0x2   :  { %14 = vsyncpa [#allocation9], 0 }
   0x3   :  { %15 = vsyncpa [#allocation4], 0  ;;  %s35_s26 = sshll.u32 %s1490_s2, 4  ;;  %s1103_s27 = smov [#allocation5]   ;;  %s36_s26 = int_to_ptr.hbm [resolvable:$true] %s35_s26 }
   0x4   :  { %s37_s28 = sshll.u32 %s1103_s27, 4  ;;  %s20_s8 = sshll.u32 %s1488_s0, 4  ;;  %s38_s28 = int_to_ptr.vmem [resolvable:$true] %s37_s28  ;;  %s21_s8 = int_to_ptr.hbm [resolvable:$true] %s20_s8 }
   0x5   :  { %s1104_s9 = smov 128   ;;  %s1105_s10 = smov 8  }
   0x6   :  { %43 = dma.hbm_to_vmem [thread:$0]  %s36_s26, 512, %s38_s28, [#allocation6], %s1104_s9, %s1104_s9, %s1105_s10  }
   0x7   :  { %s1106_s11 = smov [#allocation2]   ;;  %s48_s2 = sshll.u32 %s1491_s3, 4  ;;  %s49_s2 = int_to_ptr.hbm [resolvable:$true] %s48_s2 }
   0x8   :  { %s22_s12 = sshll.u32 %s1106_s11, 4  ;;  %s63_s16 = sshll.u32 %s1493_s5, 4  ;;  %s23_s12 = int_to_ptr.vmem [resolvable:$true] %s22_s12  ;;  %s64_s16 = int_to_ptr.hbm [resolvable:$true] %s63_s16 }
   0x9   :  { %28 = dma.hbm_to_vmem [thread:$0]  %s21_s8, 256, %s23_s12, [#allocation3], %s1104_s9, %s1104_s9, %s1105_s10  }
   0xa   :  { %s1107_s17 = smov [#allocation7]   ;;  %s1108_s19 = smov [#allocation8]  }
   0xb   :  { %s50_s18 = sshll.u32 %s1107_s17, 4  ;;  %s65_s3 = sshll.u32 %s1108_s19, 4  ;;  %s51_s18 = int_to_ptr.vmem [resolvable:$true] %s50_s18  ;;  %s66_s3 = int_to_ptr.vmem [resolvable:$true] %s65_s3 }
   0xc   :  { %56 = dma.hbm_to_vmem [thread:$0]  %s49_s2, 512, %s51_s18, [#allocation6], %s1104_s9, %s1104_s9, %s1105_s10  }
   0xd   :  { %71 = dma.hbm_to_vmem [thread:$0]  %s64_s16, 256, %s66_s3, [#allocation9], %s1104_s9, %s1104_s9, %s1105_s10  }
   0xe   :  { %1095 = dma.done.wait [#allocation3], 256  }
   0xf   :  { %1096 = vsyncadd [#allocation3], 4294967040 }
  0x10   :  { %1097 = dma.done.wait [#allocation6], 1024  }
  0x11   :  { %1098 = vsyncadd [#allocation6], 4294966272 }
  0x12   :  { %1099 = dma.done.wait [#allocation9], 256  }
  0x13   :  { %1100 = vsyncadd [#allocation9], 4294967040  ;;  %v104_v0 = vld [vmem:[%s1489_s1 + $0x50] sm:$0xff]  ;;  %v101_v1 = vld [vmem:[%s1489_s1 + $0x38] sm:$0xff]  ;;  %vm106_vm0 = vcmask 261120   ;;  %s1109_s14 = smov 120  }
  0x14   :  { %148 = vmatpush.msra.mxu1 %v104_v0  ;;  %v98_v2 = vld [vmem:[%s1489_s1 + $0x20] sm:$0xff]  ;;  %v103_v3 = vld [vmem:[%s1489_s1 + $0x48] sm:$0xff]  ;;  %v100_v4 = vld [vmem:[%s1489_s1 + $0x30] sm:$0xff]  ;;  %s1110_s2 = smov 112   ;;  %s1111_s0 = smov 104   ;;  %vm247_vm1 = vcmask 64512  }
  0x15   :  { %125 = vmatpush.msra.mxu0 %v103_v3  ;;  %v95_v5 = vld [vmem:[%s1489_s1 + $0x8] sm:$0xff]  ;;  %v97_v6 = vld [vmem:[%s1489_s1 + $0x18] sm:$0xff]  ;;  %v1201_v7 = vld [vmem:[#allocation2] sm:$0xff]  ;;  %vm321_vm2 = vcmask 523264   ;;  %s840_s20 = sshll.u32 %s1495_s7, 4  ;;  %s841_s20 = int_to_ptr.hbm [resolvable:$true] %s840_s20 }
  0x16   :  { %149 = vmatpush.msra.mxu1 %v101_v1  ;;  %v94_v8 = vld [vmem:[%s1489_s1] sm:$0xff]  ;;  %v1210_v9 = vld [vmem:[#allocation2 + $0x8] sm:$0xff]  ;;  %v1216_v11 = vld [vmem:[#allocation8] sm:$0xff] }
  0x17   :  { %126 = vmatpush.msra.mxu0 %v100_v4  ;;  %v185_v12 = vperm.slane %v1216_v11, 1  ;;  %v182_v17 = vperm.slane %v1216_v11, 0  ;;  %v105_v21 = vld [vmem:[%s1489_s1 + $0x58] sm:$0xff]  ;;  %v102_v22 = vld [vmem:[%s1489_s1 + $0x40] sm:$0xff]  ;;  %v99_v23 = vld [vmem:[%s1489_s1 + $0x28] sm:$0xff] }
  0x18   :  { %150 = vmatpush.msra.mxu1 %v98_v2  ;;  %171 = vmatpush.msra.mxu2 %v105_v21  ;;  %v96_v24 = vld [vmem:[%s1489_s1 + $0x10] sm:$0xff]  ;;  %v239_v39 = vld [vmem:[%s1494_s6] sm:$0xff]  ;;  %v240_v47 = vld [vmem:[%s1494_s6 + $0x8] sm:$0xff] }
  0x19   :  { %127 = vmatpush.msra.mxu0 %v97_v6  ;;  %v241_v40 = vld [vmem:[%s1494_s6 + $0x10] sm:$0xff]  ;;  %v242_v48 = vld [vmem:[%s1494_s6 + $0x18] sm:$0xff]  ;;  %v243_v55 = vld [vmem:[%s1494_s6 + $0x20] sm:$0xff] }
  0x1a   :  { %151 = vmatpush.msra.mxu1 %v95_v5  ;;  %172 = vmatpush.msra.mxu2 %v102_v22  ;;  %v244_v59 = vld [vmem:[%s1494_s6 + $0x28] sm:$0xff]  ;;  %v245_v63 = vld [vmem:[%s1494_s6 + $0x30] sm:$0xff]  ;;  %v246_v3 = vld [vmem:[%s1494_s6 + $0x38] sm:$0xff]  ;;  %s1112_s6 = smov 16  }
  0x1b   :  { %857 = vmatmul.msk.f32.vlgmr.msra.gmra.mxu1 %vm106_vm0, %v1201_v7  ;;  %128 = vmatpush.msra.mxu0 %v94_v8  ;;  %v188_v8 = vperm.slane %v1216_v11, 2 }
  0x1c   :  { %855 = vmatmul.msk.f32.vlgmr.msra.gmra.mxu0 %vm106_vm0, %v1201_v7  ;;  %173 = vmatpush.msra.mxu2 %v99_v23 }
  0x1e   :  { %174 = vmatpush.msra.mxu2 %v96_v24 }
  0x1f   :  { %859 = vmatmul.msk.f32.vlgmr.msra.gmra.mxu2 %vm106_vm0, %v1201_v7 }
  0x23   :  { %858 = vmatmul.msk.f32.gmra.mxu1 %vm106_vm0, %v1210_v9 }
  0x24   :  { %856 = vmatmul.msk.f32.gmra.mxu0 %vm106_vm0, %v1210_v9 }
  0x27   :  { %860 = vmatmul.msk.f32.gmra.mxu2 %vm106_vm0, %v1210_v9 }
  0x98   :  { %v153_v10 = vpop.f32.mrf.mxu1 }
  0x99   :  { %v130_v15 = vpop.f32.mrf.mxu0  ;;  %v186_v16 = vadd.f32 %v185_v12, %v153_v10 }
  0x9a   :  { %v183_v20 = vadd.f32 %v182_v17, %v130_v15 }
  0xa0   :  { %v156_v13 = vpop.f32.mrf.mxu1 }
  0xa1   :  { %v187_v14 = vadd.f32 %v185_v12, %v156_v13  ;;  %v133_v18 = vpop.f32.mrf.mxu0 }
  0xa2   :  { %v184_v19 = vadd.f32 %v182_v17, %v133_v18  ;;  %v176_v37 = vpop.f32.mrf.mxu2 }
  0xa3   :  { %209 = vrot.lane.b32.xlu2 %v187_v14, %s1109_s14  ;;  %213 = vrot.lane.b32.xlu1 %v187_v14, %s1110_s2  ;;  %v1311_v10 = vadd.f32 %v188_v8, %v176_v37 }
  0xa4   :  { %217 = vrot.lane.b32.xlu0 %v187_v14, %s1111_s0 }
  0xaa   :  { %v179_v38 = vpop.f32.mrf.mxu2 }
  0xab   :  { %207 = vrot.lane.b32.xlu2 %v186_v16, %s1109_s14  ;;  %211 = vrot.lane.b32.xlu1 %v186_v16, %s1110_s2  ;;  %v1313_v12 = vadd.f32 %v188_v8, %v179_v38 }
  0xac   :  { %215 = vrot.lane.b32.xlu0 %v186_v16, %s1111_s0 }
  0xad   :  { %v918_v13 = vpack.i.bf16 %v1311_v10, %v1313_v12 }
  0xb3   :  { %195 = vrot.lane.b32.xlu1 %v184_v19, %s1109_s14  ;;  %197 = vrot.lane.b32.xlu2 %v183_v20, %s1110_s2 }
  0xb4   :  { %193 = vrot.lane.b32.xlu0 %v183_v20, %s1109_s14 }
  0xbb   :  { %201 = vrot.lane.b32.xlu1 %v183_v20, %s1111_s0  ;;  %203 = vrot.lane.b32.xlu2 %v184_v19, %s1111_s0 }
  0xbc   :  { %199 = vrot.lane.b32.xlu0 %v184_v19, %s1110_s2 }
  0xfd   :  { %v210_v28 = vpop.permute.xlu2 %209 }
 0x105   :  { %v208_v30 = vpop.permute.xlu2 %207 }
 0x10d   :  { %v198_v33 = vpop.permute.xlu2 %197 }
 0x115   :  { %v214_v26 = vpop.permute.xlu1 %213  ;;  %v204_v36 = vpop.permute.xlu2 %203 }
 0x116   :  { %v218_v25 = vpop.permute.xlu0 %217 }
 0x117   :  { %861 = vmatpush.xpose.msk.msrb.mxu2 %vm247_vm1, %v218_v25  ;;  %889 = vmatpush.xpose.msk.msra.mxu3 %vm247_vm1, %v218_v25 }
 0x11d   :  { %v212_v29 = vpop.permute.xlu1 %211 }
 0x11e   :  { %v216_v27 = vpop.permute.xlu0 %215 }
 0x11f   :  { %862 = vmatpush.xpose.msk.msrb.mxu2 %vm247_vm1, %v216_v27  ;;  %890 = vmatpush.xpose.msk.msra.mxu3 %vm247_vm1, %v216_v27 }
 0x123   :  { %863 = vmatpush.xpose.msk.msrb.mxu2 %vm247_vm1, %v214_v26  ;;  %891 = vmatpush.xpose.msk.msra.mxu3 %vm247_vm1, %v214_v26 }
 0x125   :  { %v196_v32 = vpop.permute.xlu1 %195 }
 0x126   :  { %v194_v31 = vpop.permute.xlu0 %193 }
 0x127   :  { %864 = vmatpush.xpose.msk.msrb.mxu2 %vm247_vm1, %v212_v29  ;;  %892 = vmatpush.xpose.msk.msra.mxu3 %vm247_vm1, %v212_v29 }
 0x12b   :  { %865 = vmatpush.xpose.msk.msrb.mxu2 %vm247_vm1, %v210_v28  ;;  %893 = vmatpush.xpose.msk.msra.mxu3 %vm247_vm1, %v210_v28 }
 0x12d   :  { %v202_v35 = vpop.permute.xlu1 %201 }
 0x12e   :  { %v200_v34 = vpop.permute.xlu0 %199 }
 0x12f   :  { %866 = vmatpush.xpose.msk.msrb.mxu2 %vm247_vm1, %v208_v30  ;;  %894 = vmatpush.xpose.msk.msra.mxu3 %vm247_vm1, %v208_v30 }
 0x133   :  { %867 = vmatpush.xpose.msk.msrb.mxu2 %vm247_vm1, %v187_v14  ;;  %895 = vmatpush.xpose.msk.msra.mxu3 %vm247_vm1, %v187_v14 }
 0x137   :  { %868 = vmatpush.xpose.msk.msrb.mxu2 %vm247_vm1, %v186_v16  ;;  %896 = vmatpush.xpose.msk.msra.mxu3 %vm247_vm1, %v186_v16 }
 0x13a   :  { %869 = vmatmul.msk.f32.vlgmr.msrb.gmra.mxu2 %vm247_vm1, %v183_v20  ;;  %871 = vmatmul.msk.f32.vlgmr.msra.gmra.mxu3 %vm247_vm1, %v194_v31 }
 0x142   :  { %870 = vmatmul.msk.f32.gmra.mxu2 %vm247_vm1, %v184_v19  ;;  %872 = vmatmul.msk.f32.gmra.mxu3 %vm247_vm1, %v196_v32 }
 0x14a   :  { %873 = vmatmul.msk.f32.gmra.mxu3 %vm247_vm1, %v198_v33 }
 0x152   :  { %874 = vmatmul.msk.f32.gmra.mxu3 %vm247_vm1, %v200_v34 }
 0x15a   :  { %875 = vmatmul.msk.f32.gmra.mxu3 %vm247_vm1, %v202_v35 }
 0x162   :  { %876 = vmatmul.msk.f32.gmra.mxu3 %vm247_vm1, %v204_v36 }
 0x1bd   :  { %v297_v41 = vpop.f32.mrf.mxu2  ;;  %v303_v42 = vpop.f32.mrf.mxu3 }
 0x1be   :  { %v298_v43 = vadd.f32 %v297_v41, %v239_v39  ;;  %v304_v44 = vadd.f32 %v303_v42, %v241_v40 }
 0x1c0   :  { %v328_v45 = vsel %vm321_vm2, %v304_v44, -inf  ;;  %v322_v46 = vsel %vm321_vm2, %v298_v43, -inf }
 0x1c1   :  { %329 = vmax.xlane.f32.xlu2 %v328_v45  ;;  %323 = vmax.xlane.f32.xlu0 %v322_v46 }
 0x1c5   :  { %v300_v49 = vpop.f32.mrf.mxu2  ;;  %v306_v50 = vpop.f32.mrf.mxu3 }
 0x1c6   :  { %v301_v51 = vadd.f32 %v300_v49, %v240_v47  ;;  %v307_v52 = vadd.f32 %v306_v50, %v242_v48 }
 0x1c8   :  { %v331_v53 = vsel %vm321_vm2, %v307_v52, -inf  ;;  %v325_v54 = vsel %vm321_vm2, %v301_v51, -inf }
 0x1c9   :  { %332 = vmax.xlane.f32.xlu2 %v331_v53  ;;  %326 = vmax.xlane.f32.xlu1 %v325_v54 }
 0x1cd   :  { %v309_v56 = vpop.f32.mrf.mxu3 }
 0x1ce   :  { %v1291_v57 = vadd.f32 %v309_v56, %v243_v55 }
 0x1d0   :  { %v334_v58 = vsel %vm321_vm2, %v1291_v57, -inf }
 0x1d1   :  { %335 = vmax.xlane.f32.xlu0 %v334_v58 }
 0x1d5   :  { %v312_v60 = vpop.f32.mrf.mxu3 }
 0x1d6   :  { %v313_v61 = vadd.f32 %v312_v60, %v244_v59 }
 0x1d8   :  { %v337_v62 = vsel %vm321_vm2, %v313_v61, -inf }
 0x1d9   :  { %338 = vmax.xlane.f32.xlu1 %v337_v62 }
 0x1dd   :  { %v315_v0 = vpop.f32.mrf.mxu3 }
 0x1de   :  { %v316_v1 = vadd.f32 %v315_v0, %v245_v63 }
 0x1e0   :  { %v340_v2 = vsel %vm321_vm2, %v316_v1, -inf }
 0x1e1   :  { %341 = vmax.xlane.f32.xlu2 %v340_v2 }
 0x1e5   :  { %v318_v4 = vpop.f32.mrf.mxu3 }
 0x1e6   :  { %v1306_v5 = vadd.f32 %v318_v4, %v246_v3 }
 0x1e8   :  { %v343_v6 = vsel %vm321_vm2, %v1306_v5, -inf }
 0x1e9   :  { %344 = vmax.xlane.f32.xlu1 %v343_v6 }
 0x1f9   :  { %919 = vrot.lane.b32.xlu2 %v918_v13, %s1111_s0 }
 0x202   :  { %924 = vrot.lane.b32.xlu1 %v918_v13, %s1110_s2 }
 0x234   :  { %v330_v14 = vpop.xlane.xlu2 %329  ;;  %v324_v15 = vpop.xlane.xlu0 %323 }
 0x235   :  { %v348_v16 = vsub.f32 %v304_v44, %v330_v14  ;;  %v346_v17 = vsub.f32 %v298_v43, %v324_v15 }
 0x237   :  { %v358_v18 = vmul.f32 1.442695, %v348_v16  ;;  %v354_v19 = vmul.f32 1.442695, %v346_v17 }
 0x239   :  { %933 = vpow2.f32 %v358_v18 }
 0x23a   :  { %935 = vpow2.f32 %v354_v19 }
 0x23c   :  { %v333_v20 = vpop.xlane.xlu2 %332  ;;  %v327_v21 = vpop.xlane.xlu1 %326 }
 0x23d   :  { %v349_v22 = vsub.f32 %v307_v52, %v333_v20  ;;  %v347_v23 = vsub.f32 %v301_v51, %v327_v21 }
 0x23f   :  { %v1319_v24 = vpop.eup %933  ;;  %v360_v25 = vmul.f32 1.442695, %v349_v22  ;;  %v356_v26 = vmul.f32 1.442695, %v347_v23 }
 0x240   :  { %v1321_v27 = vpop.eup %935  ;;  %v376_v28 = vsel %vm321_vm2, %v1319_v24, 0.0 }
 0x241   :  { %937 = vpow2.f32 %v360_v25  ;;  %v370_v29 = vsel %vm321_vm2, %v1321_v27, 0.0  ;;  %377 = vadd.xlane.f32.xlu2 %v376_v28 }
 0x242   :  { %939 = vpow2.f32 %v356_v26  ;;  %371 = vadd.xlane.f32.xlu0 %v370_v29 }
 0x244   :  { %v336_v48 = vpop.xlane.xlu0 %335 }
 0x245   :  { %v350_v51 = vsub.f32 %v1291_v57, %v336_v48 }
 0x247   :  { %v1327_v30 = vpop.eup %937  ;;  %v362_v53 = vmul.f32 1.442695, %v350_v51 }
 0x248   :  { %v1329_v31 = vpop.eup %939  ;;  %v379_v32 = vsel %vm321_vm2, %v1327_v30, 0.0 }
 0x249   :  { %380 = vadd.xlane.f32.xlu1 %v379_v32  ;;  %v373_v33 = vsel %vm321_vm2, %v1329_v31, 0.0 }
 0x24a   :  { %374 = vadd.xlane.f32.xlu0 %v373_v33 }
 0x24c   :  { %v339_v34 = vpop.xlane.xlu1 %338 }
 0x24d   :  { %v351_v35 = vsub.f32 %v313_v61, %v339_v34 }
 0x24f   :  { %v364_v36 = vmul.f32 1.442695, %v351_v35 }
 0x251   :  { %941 = vpow2.f32 %v364_v36 }
 0x254   :  { %v342_v37 = vpop.xlane.xlu2 %341 }
 0x255   :  { %v352_v38 = vsub.f32 %v316_v1, %v342_v37 }
 0x257   :  { %v1335_v39 = vpop.eup %941  ;;  %v366_v40 = vmul.f32 1.442695, %v352_v38 }
 0x258   :  { %v385_v41 = vsel %vm321_vm2, %v1335_v39, 0.0 }
 0x259   :  { %943 = vpow2.f32 %v366_v40  ;;  %386 = vadd.xlane.f32.xlu2 %v385_v41 }
 0x25a   :  { %945 = vpow2.f32 %v362_v53 }
 0x25c   :  { %v920_v42 = vpop.permute.xlu2 %919  ;;  %v345_v47 = vpop.xlane.xlu1 %344 }
 0x25d   :  { %v921_v43 = vunpack.i.l.bf16 %v920_v42  ;;  %v922_v45 = vunpack.i.h.bf16 %v920_v42  ;;  %v353_v54 = vsub.f32 %v1306_v5, %v345_v47 }
 0x25e   :  { %929 = vrot.lane.b32.xlu0 %v918_v13, %s1109_s14  ;;  %s1113_s14 = smov 24  }
 0x25f   :  { %v1340_v44 = vpop.eup %943  ;;  %546 = vmatpush.msrb.mxu0 %v921_v43  ;;  %897 = vmatpush.msrb.mxu1 %v921_v43  ;;  %v368_v55 = vmul.f32 1.442695, %v353_v54 }
 0x260   :  { %v388_v46 = vsel %vm321_vm2, %v1340_v44, 0.0  ;;  %v1346_v56 = vpop.eup %945 }
 0x261   :  { %547 = vmatpush.msrb.mxu0 %v922_v45  ;;  %898 = vmatpush.msrb.mxu1 %v922_v45  ;;  %947 = vpow2.f32 %v368_v55  ;;  %v382_v58 = vsel %vm321_vm2, %v1346_v56, 0.0 }
 0x262   :  { %389 = vadd.xlane.f32.xlu1 %v388_v46 }
 0x267   :  { %v1350_v59 = vpop.eup %947 }
 0x268   :  { %v391_v57 = vsel %vm321_vm2, %v1350_v59, 0.0 }
 0x274   :  { %v925_v49 = vpop.permute.xlu1 %924 }
 0x275   :  { %v926_v50 = vunpack.i.l.bf16 %v925_v49  ;;  %v927_v52 = vunpack.i.h.bf16 %v925_v49 }
 0x277   :  { %548 = vmatpush.msrb.mxu0 %v926_v50  ;;  %899 = vmatpush.msrb.mxu1 %v926_v50 }
 0x279   :  { %549 = vmatpush.msrb.mxu0 %v927_v52  ;;  %900 = vmatpush.msrb.mxu1 %v927_v52 }
 0x288   :  { %383 = vadd.xlane.f32.xlu0 %v382_v58 }
 0x290   :  { %392 = vadd.xlane.f32.xlu0 %v391_v57 }
 0x2b4   :  { %v378_v1 = vpop.xlane.xlu2 %377 }
 0x2b5   :  { %v372_v60 = vpop.xlane.xlu0 %371  ;;  %v435_v41 = vand.u32 2147483648, %v378_v1  ;;  %vm429_vm12 = vweird.f32 %v378_v1  ;;  %v433_v42 = vand.u32 2147483647, %v378_v1 }
 0x2b6   :  { %949 = vrcp.f32 %v372_v60  ;;  %v405_v14 = vand.u32 2147483648, %v372_v60  ;;  %vm399_vm4 = vweird.f32 %v372_v60  ;;  %v403_v15 = vand.u32 2147483647, %v372_v60 }
 0x2b7   :  { %v436_v45 = vor.u32 1.1754944e-38, %v435_v41  ;;  %vm434_vm14 = vcmp.eq.f32.partialorder %v433_v42, 8.507059e+37 }
 0x2b8   :  { %v406_v21 = vor.u32 1.1754944e-38, %v405_v14  ;;  %vm404_vm6 = vcmp.eq.f32.partialorder %v403_v15, 8.507059e+37 }
 0x2bc   :  { %v950_v62 = vpop.eup %949  ;;  %v1354_v8 = vpop.xlane.xlu1 %380 }
 0x2bd   :  { %v375_v61 = vpop.xlane.xlu0 %374  ;;  %v395_v63 = vmul.f32 %v950_v62, %v372_v60  ;;  %vm400_vm3 = vweird.f32 %v950_v62  ;;  %v450_v48 = vand.u32 2147483648, %v1354_v8  ;;  %v448_v50 = vand.u32 2147483647, %v1354_v8 }
 0x2be   :  { %951 = vrcp.f32 %v375_v61  ;;  %vm401_vm5 = vmor %vm399_vm4, %vm400_vm3  ;;  %v420_v29 = vand.u32 2147483648, %v375_v61  ;;  %vm414_vm8 = vweird.f32 %v375_v61  ;;  %v418_v33 = vand.u32 2147483647, %v375_v61 }
 0x2bf   :  { %v396_v0 = vsub.f32 1.0, %v395_v63  ;;  %953 = vrcp.f32 %v378_v1  ;;  %vm444_vm3 = vweird.f32 %v1354_v8  ;;  %v451_v51 = vor.u32 1.1754944e-38, %v450_v48 }
 0x2c0   :  { %955 = vrcp.f32 %v1354_v8  ;;  %v421_v37 = vor.u32 1.1754944e-38, %v420_v29  ;;  %vm419_vm10 = vcmp.eq.f32.partialorder %v418_v33, 8.507059e+37 }
 0x2c1   :  { %v397_v3 = vmul.f32 %v950_v62, %v396_v0 }
 0x2c3   :  { %v398_v5 = vadd.f32 %v950_v62, %v397_v3 }
 0x2c4   :  { %v952_v2 = vpop.eup %951 }
 0x2c5   :  { %v410_v4 = vmul.f32 %v952_v2, %v375_v61  ;;  %v954_v13 = vpop.eup %953  ;;  %v402_v20 = vsel %vm401_vm5, %v950_v62, %v398_v5  ;;  %vm415_vm7 = vweird.f32 %v952_v2  ;;  %vm449_vm5 = vcmp.eq.f32.partialorder %v448_v50, 8.507059e+37 }
 0x2c6   :  { %v425_v18 = vmul.f32 %v954_v13, %v378_v1  ;;  %v407_v23 = vsel %vm404_vm6, %v406_v21, %v402_v20  ;;  %v956_v28 = vpop.eup %955  ;;  %vm416_vm9 = vmor %vm414_vm8, %vm415_vm7  ;;  %vm430_vm11 = vweird.f32 %v954_v13 }
 0x2c7   :  { %v411_v6 = vsub.f32 1.0, %v410_v4  ;;  %v408_v32 = vmul.f32 %v1321_v27, %v407_v23  ;;  %v440_v35 = vmul.f32 %v956_v28, %v1354_v8  ;;  %vm431_vm13 = vmor %vm429_vm12, %vm430_vm11  ;;  %vm445_vm15 = vweird.f32 %v956_v28 }
 0x2c8   :  { %v426_v25 = vsub.f32 1.0, %v425_v18  ;;  %vm446_vm4 = vmor %vm444_vm3, %vm445_vm15 }
 0x2c9   :  { %v412_v19 = vmul.f32 %v952_v2, %v411_v6  ;;  %v441_v40 = vsub.f32 1.0, %v440_v35 }
 0x2ca   :  { %v427_v34 = vmul.f32 %v954_v13, %v426_v25 }
 0x2cb   :  { %v413_v26 = vadd.f32 %v952_v2, %v412_v19 }
 0x2cc   :  { %v387_v54 = vpop.xlane.xlu2 %386 }
 0x2cd   :  { %v417_v36 = vsel %vm416_vm9, %v952_v2, %v413_v26  ;;  %957 = vrcp.f32 %v387_v54  ;;  %vm474_vm11 = vweird.f32 %v387_v54  ;;  %v480_v18 = vand.u32 2147483648, %v387_v54 }
 0x2ce   :  { %v422_v38 = vsel %vm419_vm10, %v421_v37, %v417_v36  ;;  %v478_v23 = vand.u32 2147483647, %v387_v54 }
 0x2cf   :  { %v423_v27 = vmul.f32 %v1329_v31, %v422_v38  ;;  %v481_v33 = vor.u32 1.1754944e-38, %v480_v18 }
 0x2d0   :  { %v930_v16 = vpop.permute.xlu0 %929  ;;  %vm479_vm15 = vcmp.eq.f32.partialorder %v478_v23, 8.507059e+37 }
 0x2d1   :  { %v931_v17 = vunpack.i.l.bf16 %v930_v16  ;;  %v932_v22 = vunpack.i.h.bf16 %v930_v16 }
 0x2d3   :  { %550 = vmatpush.msrb.mxu0 %v931_v17  ;;  %901 = vmatpush.msrb.mxu1 %v931_v17  ;;  %v958_v55 = vpop.eup %957 }
 0x2d4   :  { %vm475_vm9 = vweird.f32 %v958_v55 }
 0x2d5   :  { %551 = vmatpush.msrb.mxu0 %v932_v22  ;;  %902 = vmatpush.msrb.mxu1 %v932_v22  ;;  %v1373_v58 = vpop.xlane.xlu1 %389  ;;  %vm1378_vm12 = vmor %vm474_vm11, %vm475_vm9  ;;  %vm608_vm9 = vcmask 195584  }
 0x2d6   :  { %v495_v38 = vand.u32 2147483648, %v1373_v58 }
 0x2d7   :  { %552 = vmatpush.msrb.mxu0 %v1313_v12  ;;  %903 = vmatpush.msrb.mxu1 %v1313_v12  ;;  %v428_v12 = vadd.f32 %v954_v13, %v427_v34 }
 0x2d9   :  { %553 = vmatpush.msrb.mxu0 %v1311_v10  ;;  %904 = vmatpush.msrb.mxu1 %v1311_v10  ;;  %v442_v10 = vmul.f32 %v956_v28, %v441_v40  ;;  %v432_v43 = vsel %vm431_vm13, %v954_v13, %v428_v12 }
 0x2da   :  { %877 = vmatmul.msk.f32.vlgmr.msrb.gmra.mxu0 %vm321_vm2, %v408_v32  ;;  %v437_v46 = vsel %vm434_vm14, %v436_v45, %v432_v43 }
 0x2db   :  { %v443_v47 = vadd.f32 %v956_v28, %v442_v10  ;;  %v438_v49 = vmul.f32 %v1319_v24, %v437_v46  ;;  %v470_v24 = vmul.f32 %v958_v55, %v387_v54  ;;  %v496_v10 = vor.u32 1.1754944e-38, %v495_v38 }
 0x2dd   :  { %v447_v31 = vsel %vm446_vm4, %v956_v28, %v443_v47  ;;  %v471_v61 = vsub.f32 1.0, %v470_v24 }
 0x2de   :  { %v452_v52 = vsel %vm449_vm5, %v451_v51, %v447_v31  ;;  %v613_v51 = vld [vmem:[#allocation5 + $0x10] sm:$0xff] }
 0x2df   :  { %v453_v53 = vmul.f32 %v1327_v30, %v452_v52  ;;  %v472_v30 = vmul.f32 %v958_v55, %v471_v61  ;;  %v612_v52 = vld [vmem:[#allocation5 + $0x8] sm:$0xff] }
 0x2e1   :  { %v473_v14 = vadd.f32 %v958_v55, %v472_v30 }
 0x2e2   :  { %878 = vmatmul.msk.f32.gmra.mxu0 %vm321_vm2, %v423_v27  ;;  %v493_v27 = vand.u32 2147483647, %v1373_v58 }
 0x2e3   :  { %v477_v26 = vsel %vm1378_vm12, %v958_v55, %v473_v14 }
 0x2e4   :  { %v482_v35 = vsel %vm479_vm15, %v481_v33, %v477_v26 }
 0x2e5   :  { %v483_v12 = vmul.f32 %v1335_v39, %v482_v35  ;;  %v706_v35 = vld [vmem:[#allocation7 + $0x10] sm:$0xff] }
 0x2ea   :  { %879 = vmatmul.msk.f32.gmra.mxu0 %vm321_vm2, %v438_v49 }
 0x2f2   :  { %880 = vmatmul.msk.f32.gmra.mxu0 %vm321_vm2, %v453_v53  ;;  %v611_v53 = vld [vmem:[#allocation5] sm:$0xff] }
 0x2fb   :  { %v384_v57 = vpop.xlane.xlu0 %383 }
 0x2fc   :  { %959 = vrcp.f32 %v384_v57  ;;  %v465_v2 = vand.u32 2147483648, %v384_v57  ;;  %v463_v5 = vand.u32 2147483647, %v384_v57  ;;  %vm459_vm7 = vweird.f32 %v384_v57 }
 0x2fd   :  { %961 = vrcp.f32 %v1373_v58 }
 0x2fe   :  { %v466_v13 = vor.u32 1.1754944e-38, %v465_v2  ;;  %vm464_vm10 = vcmp.eq.f32.partialorder %v463_v5, 8.507059e+37  ;;  %v615_v2 = vperm.slane %v1216_v11, 3 }
 0x302   :  { %v960_v60 = vpop.eup %959 }
 0x303   :  { %v455_v62 = vmul.f32 %v960_v60, %v384_v57  ;;  %v393_v63 = vpop.xlane.xlu0 %392  ;;  %v962_v0 = vpop.eup %961  ;;  %vm460_vm6 = vweird.f32 %v960_v60 }
 0x304   :  { %963 = vrcp.f32 %v393_v63  ;;  %v485_v3 = vmul.f32 %v962_v0, %v1373_v58  ;;  %vm461_vm8 = vmor %vm459_vm7, %vm460_vm6  ;;  %v510_v25 = vand.u32 2147483648, %v393_v63  ;;  %v508_v32 = vand.u32 2147483647, %v393_v63 }
 0x305   :  { %v456_v1 = vsub.f32 1.0, %v455_v62  ;;  %vm504_vm14 = vweird.f32 %v393_v63  ;;  %vm490_vm5 = vweird.f32 %v962_v0  ;;  %vm489_vm6 = vweird.f32 %v1373_v58 }
 0x306   :  { %v486_v15 = vsub.f32 1.0, %v485_v3  ;;  %vm509_vm4 = vcmp.eq.f32.partialorder %v508_v32, 8.507059e+37  ;;  %vm491_vm7 = vmor %vm489_vm6, %vm490_vm5 }
 0x307   :  { %v457_v4 = vmul.f32 %v960_v60, %v456_v1 }
 0x308   :  { %v487_v28 = vmul.f32 %v962_v0, %v486_v15 }
 0x309   :  { %v458_v6 = vadd.f32 %v960_v60, %v457_v4 }
 0x30a   :  { %v964_v8 = vpop.eup %963  ;;  %v488_v37 = vadd.f32 %v962_v0, %v487_v28 }
 0x30b   :  { %v500_v16 = vmul.f32 %v964_v8, %v393_v63  ;;  %v462_v17 = vsel %vm461_vm8, %v960_v60, %v458_v6  ;;  %vm505_vm13 = vweird.f32 %v964_v8  ;;  %vm494_vm8 = vcmp.eq.f32.partialorder %v493_v27, 8.507059e+37  ;;  %v754_v27 = vld [vmem:[%s1492_s4 + $0x70] sm:$0xff] }
 0x30c   :  { %v467_v19 = vsel %vm464_vm10, %v466_v13, %v462_v17  ;;  %vm506_vm3 = vmor %vm504_vm14, %vm505_vm13  ;;  %v492_v42 = vsel %vm491_vm7, %v962_v0, %v488_v37  ;;  %v704_v37 = vld [vmem:[#allocation7] sm:$0xff] }
 0x30d   :  { %v501_v20 = vsub.f32 1.0, %v500_v16  ;;  %v468_v21 = vmul.f32 %v1346_v56, %v467_v19  ;;  %v511_v56 = vor.u32 1.1754944e-38, %v510_v25  ;;  %v497_v43 = vsel %vm494_vm8, %v496_v10, %v492_v42  ;;  %v753_v42 = vld [vmem:[%s1492_s4 + $0x68] sm:$0xff] }
 0x30e   :  { %v498_v45 = vmul.f32 %v1340_v44, %v497_v43  ;;  %v614_v44 = vld [vmem:[#allocation5 + $0x18] sm:$0xff]  ;;  %v1114_v16 = vmov 32.0  }
 0x30f   :  { %v502_v29 = vmul.f32 %v964_v8, %v501_v20  ;;  %881 = vmatmul.msk.f32.gmra.mxu0 %vm321_vm2, %v468_v21  ;;  %634 = vmatpush.msra.mxu1 %v614_v44  ;;  %965 = vrcp.f32 %v1114_v16  ;;  %v741_v16 = vld [vmem:[%s1492_s4 + $0x8] sm:$0xff] }
 0x311   :  { %v503_v34 = vadd.f32 %v964_v8, %v502_v29  ;;  %635 = vmatpush.msra.mxu1 %v613_v51  ;;  %v748_v51 = vld [vmem:[%s1492_s4 + $0x40] sm:$0xff] }
 0x313   :  { %v507_v36 = vsel %vm506_vm3, %v964_v8, %v503_v34  ;;  %636 = vmatpush.msra.mxu1 %v612_v52 }
 0x314   :  { %v512_v40 = vsel %vm509_vm4, %v511_v56, %v507_v36  ;;  %v707_v56 = vld [vmem:[#allocation7 + $0x18] sm:$0xff]  ;;  %v705_v36 = vld [vmem:[#allocation7 + $0x8] sm:$0xff] }
 0x315   :  { %v513_v41 = vmul.f32 %v1350_v59, %v512_v40  ;;  %637 = vmatpush.msra.mxu1 %v611_v53  ;;  %v966_v17 = vpop.eup %965  ;;  %727 = vmatpush.msra.mxu2 %v707_v56 }
 0x316   :  { %v654_v18 = vmul.f32 32.0, %v966_v17 }
 0x317   :  { %882 = vmatmul.msk.f32.gmra.mxu0 %vm321_vm2, %v483_v12  ;;  %884 = vmatmul.msk.f32.vlgmr.msrb.gmra.mxu1 %vm321_vm2, %v513_v41  ;;  %v755_v41 = vld [vmem:[%s1492_s4 + $0x78] sm:$0xff] }
 0x318   :  { %v655_v19 = vsub.f32 1.0, %v654_v18  ;;  %728 = vmatpush.msra.mxu2 %v706_v35  ;;  %757 = vmatpush.msrb.mxu1 %v755_v41  ;;  %v708_v18 = vperm.slane %v1216_v11, 4 }
 0x31a   :  { %v656_v20 = vmul.f32 %v966_v17, %v655_v19  ;;  %729 = vmatpush.msra.mxu2 %v705_v36  ;;  %758 = vmatpush.msrb.mxu1 %v754_v27 }
 0x31c   :  { %v657_v21 = vadd.f32 %v966_v17, %v656_v20  ;;  %730 = vmatpush.msra.mxu2 %v704_v37  ;;  %759 = vmatpush.msrb.mxu1 %v753_v42 }
 0x31f   :  { %883 = vmatmul.msk.f32.gmra.mxu0 %vm321_vm2, %v498_v45  ;;  %vm605_vm2 = vcmask 130048   ;;  %v752_v45 = vld [vmem:[%s1492_s4 + $0x60] sm:$0xff] }
 0x320   :  { %760 = vmatpush.msrb.mxu1 %v752_v45 }
 0x357   :  { %v555_v46 = vpop.f32.mrf.mxu0 }
 0x35f   :  { %v558_v47 = vpop.f32.mrf.mxu0 }
 0x367   :  { %v561_v39 = vpop.f32.mrf.mxu0 }
 0x368   :  { %581 = vrot.lane.b32.xlu2 %v561_v39, %s1105_s10 }
 0x36f   :  { %v564_v59 = vpop.f32.mrf.mxu0 }
 0x370   :  { %583 = vrot.lane.b32.xlu2 %v564_v59, %s1105_s10  ;;  %v751_v59 = vld [vmem:[%s1492_s4 + $0x58] sm:$0xff] }
 0x371   :  { %761 = vmatpush.msrb.mxu1 %v751_v59 }
 0x38c   :  { %v567_v48 = vpop.f32.mrf.mxu0 }
 0x38d   :  { %589 = vrot.lane.b32.xlu1 %v567_v48, %s1112_s6 }
 0x394   :  { %v570_v49 = vpop.f32.mrf.mxu0  ;;  %v576_v50 = vpop.f32.mrf.mxu1 }
 0x395   :  { %599 = vrot.lane.b32.xlu1 %v576_v50, %s1113_s14 }
 0x39c   :  { %v573_v31 = vpop.f32.mrf.mxu0 }
 0x39d   :  { %597 = vrot.lane.b32.xlu0 %v573_v31, %s1113_s14  ;;  %v749_v31 = vld [vmem:[%s1492_s4 + $0x48] sm:$0xff] }
 0x3a5   :  { %591 = vrot.lane.b32.xlu0 %v570_v49, %s1112_s6  ;;  %v750_v49 = vld [vmem:[%s1492_s4 + $0x50] sm:$0xff] }
 0x3a6   :  { %762 = vmatpush.msrb.mxu1 %v750_v49 }
 0x3a8   :  { %763 = vmatpush.msrb.mxu1 %v749_v31 }
 0x3aa   :  { %764 = vmatpush.msrb.mxu1 %v748_v51 }
 0x3c2   :  { %v582_v54 = vpop.permute.xlu2 %581 }
 0x3c3   :  { %v603_v58 = vsel %vm247_vm1, %v555_v46, %v582_v54  ;;  %v747_v54 = vld [vmem:[%s1492_s4 + $0x38] sm:$0xff] }
 0x3c4   :  { %765 = vmatpush.msrb.mxu1 %v747_v54 }
 0x3ca   :  { %v584_v61 = vpop.permute.xlu2 %583 }
 0x3cb   :  { %v604_v62 = vsel %vm247_vm1, %v558_v47, %v584_v61  ;;  %vm658_vm1 = vweird.f32 %v966_v17 }
 0x3cc   :  { %v1405_v22 = vsel %vm658_vm1, %v966_v17, %v657_v21  ;;  %v740_v17 = vld [vmem:[%s1492_s4] sm:$0xff] }
 0x3ff   :  { %v590_v55 = vpop.permute.xlu1 %589 }
 0x400   :  { %v606_v57 = vsel %vm605_vm2, %v603_v58, %v590_v55  ;;  %v698_v55 = vperm.slane %v1216_v11, 6 }
 0x407   :  { %v600_v0 = vpop.permute.xlu1 %599 }
 0x40f   :  { %v598_v24 = vpop.permute.xlu0 %597 }
 0x410   :  { %v609_v60 = vsel %vm608_vm9, %v606_v57, %v598_v24  ;;  %v746_v24 = vld [vmem:[%s1492_s4 + $0x30] sm:$0xff] }
 0x411   :  { %885 = vmatmul.msk.f32.vlgmr.msra.gmra.mxu1 %vm106_vm0, %v609_v60 }
 0x412   :  { %766 = vmatpush.msrb.mxu1 %v746_v24 }
 0x417   :  { %v592_v63 = vpop.permute.xlu0 %591 }
 0x418   :  { %v607_v1 = vsel %vm605_vm2, %v604_v62, %v592_v63  ;;  %v701_v62 = vperm.slane %v1216_v11, 7  ;;  %v745_v63 = vld [vmem:[%s1492_s4 + $0x28] sm:$0xff] }
 0x419   :  { %v610_v30 = vsel %vm608_vm9, %v607_v1, %v600_v0  ;;  %767 = vmatpush.msrb.mxu1 %v745_v63 }
 0x41a   :  { %886 = vmatmul.msk.f32.gmra.mxu1 %vm106_vm0, %v610_v30  ;;  %v744_v30 = vld [vmem:[%s1492_s4 + $0x20] sm:$0xff] }
 0x41b   :  { %768 = vmatpush.msrb.mxu1 %v744_v30 }
 0x48e   :  { %v639_v3 = vpop.f32.mrf.mxu1 }
 0x48f   :  { %v640_v4 = vadd.f32 %v639_v3, %v615_v2 }
 0x491   :  { %v645_v5 = vadd.f32 %v640_v4, %v1201_v7  ;;  %v743_v4 = vld [vmem:[%s1492_s4 + $0x18] sm:$0xff] }
 0x492   :  { %769 = vmatpush.msrb.mxu1 %v743_v4 }
 0x493   :  { %v647_v6 = vsel %vm106_vm0, %v645_v5, 0.0 }
 0x494   :  { %648 = vadd.xlane.f32.xlu2 %v647_v6 }
 0x497   :  { %v642_v8 = vpop.f32.mrf.mxu1 }
 0x498   :  { %v643_v13 = vadd.f32 %v642_v8, %v615_v2 }
 0x49a   :  { %v646_v14 = vadd.f32 %v643_v13, %v1210_v9 }
 0x49c   :  { %v650_v15 = vsel %vm106_vm0, %v646_v14, 0.0 }
 0x49d   :  { %651 = vadd.xlane.f32.xlu0 %v650_v15  ;;  %v742_v15 = vld [vmem:[%s1492_s4 + $0x10] sm:$0xff]  ;;  %s1115_s4 = smov [#allocation10]  }
 0x49e   :  { %770 = vmatpush.msrb.mxu1 %v742_v15  ;;  %s838_s19 = sshll.u32 %s1115_s4, 4  ;;  %s839_s19 = int_to_ptr.vmem [resolvable:$true] %s838_s19 }
 0x4a0   :  { %771 = vmatpush.msrb.mxu1 %v741_v16 }
 0x4a2   :  { %772 = vmatpush.msrb.mxu1 %v740_v17 }
 0x507   :  { %v649_v7 = vpop.xlane.xlu2 %648 }
 0x508   :  { %v660_v23 = vmul.f32 %v1405_v22, %v649_v7 }
 0x50a   :  { %v662_v25 = vsub.f32 %v645_v5, %v660_v23 }
 0x50c   :  { %v664_v26 = vmul.f32 %v662_v25, %v662_v25 }
 0x50e   :  { %v666_v9 = vsel %vm106_vm0, %v664_v26, 0.0  ;;  %v756_v26 = vperm.slane %v1216_v11, 5 }
 0x50f   :  { %667 = vadd.xlane.f32.xlu1 %v666_v9 }
 0x510   :  { %v652_v28 = vpop.xlane.xlu0 %651 }
 0x511   :  { %v661_v29 = vmul.f32 %v1405_v22, %v652_v28 }
 0x513   :  { %v1410_v32 = vsub.f32 %v646_v14, %v661_v29 }
 0x515   :  { %v665_v33 = vmul.f32 %v1410_v32, %v1410_v32 }
 0x517   :  { %v669_v34 = vsel %vm106_vm0, %v665_v33, 0.0 }
 0x518   :  { %670 = vadd.xlane.f32.xlu2 %v669_v34 }
 0x582   :  { %v668_v38 = vpop.xlane.xlu1 %667 }
 0x583   :  { %v672_v40 = vmul.f32 %v668_v38, %v1405_v22 }
 0x585   :  { %v674_v12 = vadd.f32 1e-05, %v672_v40 }
 0x587   :  { %967 = vrsqrt.f32 %v674_v12  ;;  %vm682_vm11 = vweird.f32 %v674_v12 }
 0x58b   :  { %v671_v10 = vpop.xlane.xlu2 %670 }
 0x58c   :  { %v673_v43 = vmul.f32 %v671_v10, %v1405_v22 }
 0x58d   :  { %v968_v46 = vpop.eup %967 }
 0x58e   :  { %v677_v47 = vmul.f32 %v968_v46, %v674_v12  ;;  %v675_v39 = vadd.f32 1e-05, %v673_v43  ;;  %vm683_vm10 = vweird.f32 %v968_v46 }
 0x58f   :  { %vm684_vm12 = vmor %vm682_vm11, %vm683_vm10 }
 0x590   :  { %v678_v48 = vmul.f32 %v968_v46, %v677_v47  ;;  %969 = vrsqrt.f32 %v675_v39  ;;  %vm692_vm14 = vweird.f32 %v675_v39 }
 0x592   :  { %v679_v50 = vmul.f32 0.5, %v678_v48 }
 0x594   :  { %v680_v44 = vsub.f32 1.5, %v679_v50 }
 0x596   :  { %v970_v52 = vpop.eup %969  ;;  %v681_v53 = vmul.f32 %v968_v46, %v680_v44  ;;  %v93_v44 = vld [vmem:[#allocation8 + $0x8] sm:$0xff] }
 0x597   :  { %v687_v58 = vmul.f32 %v970_v52, %v675_v39  ;;  %vm693_vm13 = vweird.f32 %v970_v52  ;;  %v826_v54 = vperm.slane %v93_v44, 0 }
 0x598   :  { %v685_v57 = vsel %vm684_vm12, %v968_v46, %v681_v53  ;;  %vm694_vm15 = vmor %vm692_vm14, %vm693_vm13 }
 0x599   :  { %v696_v60 = vmul.f32 %v685_v57, %v662_v25  ;;  %v688_v61 = vmul.f32 %v970_v52, %v687_v58 }
 0x59b   :  { %v699_v0 = vmul.f32 %v698_v55, %v696_v60  ;;  %v689_v1 = vmul.f32 0.5, %v688_v61  ;;  %v829_v60 = vperm.slane %v93_v44, 1 }
 0x59d   :  { %v690_v2 = vsub.f32 1.5, %v689_v1  ;;  %v702_v3 = vadd.f32 %v701_v62, %v699_v0 }
 0x59f   :  { %v691_v5 = vmul.f32 %v970_v52, %v690_v2  ;;  %887 = vmatmul.msk.f32.vlgmr.msra.gmra.mxu2 %vm106_vm0, %v702_v3 }
 0x5a1   :  { %v695_v6 = vsel %vm694_vm15, %v970_v52, %v691_v5 }
 0x5a2   :  { %v697_v8 = vmul.f32 %v695_v6, %v1410_v32 }
 0x5a4   :  { %v700_v13 = vmul.f32 %v698_v55, %v697_v8 }
 0x5a6   :  { %v703_v14 = vadd.f32 %v701_v62, %v700_v13 }
 0x5a8   :  { %888 = vmatmul.msk.f32.gmra.mxu2 %vm106_vm0, %v703_v14 }
 0x622   :  { %v732_v19 = vpop.f32.mrf.mxu2 }
 0x623   :  { %v733_v20 = vadd.f32 %v732_v19, %v708_v18 }
 0x625   :  { %v738_v21 = vmax.f32 %v733_v20, 0.0 }
 0x627   :  { %773 = vmatmul.f32.vlgmr.msrb.gmra.mxu1 %v738_v21 }
 0x62b   :  { %v735_v7 = vpop.f32.mrf.mxu2 }
 0x62c   :  { %v736_v23 = vadd.f32 %v735_v7, %v708_v18 }
 0x62e   :  { %v739_v25 = vmax.f32 %v736_v23, 0.0 }
 0x630   :  { %776 = vmatmul.f32.gmra.mxu1 %v739_v25 }
 0x6a4   :  { %v774_v9 = vpop.f32.mrf.mxu1 }
 0x6a5   :  { %v775_v28 = vadd.f32 %v774_v9, %v756_v26 }
 0x6a7   :  { %v780_v29 = vadd.f32 %v775_v28, %v702_v3 }
 0x6a9   :  { %v782_v32 = vsel %vm106_vm0, %v780_v29, 0.0 }
 0x6aa   :  { %783 = vadd.xlane.f32.xlu0 %v782_v32 }
 0x6ad   :  { %v777_v33 = vpop.f32.mrf.mxu1 }
 0x6ae   :  { %v778_v34 = vadd.f32 %v777_v33, %v756_v26 }
 0x6b0   :  { %v781_v56 = vadd.f32 %v778_v34, %v703_v14 }
 0x6b2   :  { %v785_v35 = vsel %vm106_vm0, %v781_v56, 0.0 }
 0x6b3   :  { %786 = vadd.xlane.f32.xlu1 %v785_v35 }
 0x71d   :  { %v784_v36 = vpop.xlane.xlu0 %783 }
 0x71e   :  { %v788_v37 = vmul.f32 %v784_v36, %v1405_v22 }
 0x720   :  { %v790_v38 = vsub.f32 %v780_v29, %v788_v37 }
 0x722   :  { %v792_v40 = vmul.f32 %v790_v38, %v790_v38 }
 0x724   :  { %v794_v12 = vsel %vm106_vm0, %v792_v40, 0.0 }
 0x725   :  { %795 = vadd.xlane.f32.xlu2 %v794_v12 }
 0x726   :  { %v787_v11 = vpop.xlane.xlu1 %786 }
 0x727   :  { %v789_v41 = vmul.f32 %v787_v11, %v1405_v22 }
 0x729   :  { %v791_v27 = vsub.f32 %v781_v56, %v789_v41 }
 0x72b   :  { %v793_v42 = vmul.f32 %v791_v27, %v791_v27 }
 0x72d   :  { %v797_v10 = vsel %vm106_vm0, %v793_v42, 0.0 }
 0x72e   :  { %798 = vadd.xlane.f32.xlu0 %v797_v10 }
 0x798   :  { %v796_v43 = vpop.xlane.xlu2 %795 }
 0x799   :  { %v800_v45 = vmul.f32 %v796_v43, %v1405_v22 }
 0x79b   :  { %v802_v46 = vadd.f32 1e-05, %v800_v45 }
 0x79d   :  { %971 = vrsqrt.f32 %v802_v46  ;;  %vm810_vm4 = vweird.f32 %v802_v46 }
 0x7a1   :  { %v799_v47 = vpop.xlane.xlu0 %798 }
 0x7a2   :  { %v801_v39 = vmul.f32 %v799_v47, %v1405_v22 }
 0x7a3   :  { %v972_v59 = vpop.eup %971 }
 0x7a4   :  { %v805_v48 = vmul.f32 %v972_v59, %v802_v46  ;;  %v803_v49 = vadd.f32 1e-05, %v801_v39  ;;  %vm811_vm3 = vweird.f32 %v972_v59 }
 0x7a5   :  { %vm812_vm5 = vmor %vm810_vm4, %vm811_vm3 }
 0x7a6   :  { %v806_v50 = vmul.f32 %v972_v59, %v805_v48  ;;  %973 = vrsqrt.f32 %v803_v49  ;;  %vm820_vm7 = vweird.f32 %v803_v49 }
 0x7a8   :  { %v807_v31 = vmul.f32 0.5, %v806_v50 }
 0x7aa   :  { %v808_v51 = vsub.f32 1.5, %v807_v31 }
 0x7ac   :  { %v974_v52 = vpop.eup %973  ;;  %v809_v53 = vmul.f32 %v972_v59, %v808_v51 }
 0x7ad   :  { %v815_v55 = vmul.f32 %v974_v52, %v803_v49  ;;  %vm821_vm6 = vweird.f32 %v974_v52 }
 0x7ae   :  { %v813_v58 = vsel %vm812_vm5, %v972_v59, %v809_v53  ;;  %vm822_vm8 = vmor %vm820_vm7, %vm821_vm6 }
 0x7af   :  { %v824_v57 = vmul.f32 %v813_v58, %v790_v38  ;;  %v816_v24 = vmul.f32 %v974_v52, %v815_v55 }
 0x7b1   :  { %v827_v22 = vmul.f32 %v826_v54, %v824_v57  ;;  %v817_v61 = vmul.f32 0.5, %v816_v24 }
 0x7b3   :  { %v818_v62 = vsub.f32 1.5, %v817_v61  ;;  %v830_v63 = vadd.f32 %v829_v60, %v827_v22 }
 0x7b5   :  { %v819_v0 = vmul.f32 %v974_v52, %v818_v62  ;;  %832 = vst.msk [vmem:[#allocation10] sm:$0xff] %vm106_vm0, %v830_v63 }
 0x7b7   :  { %v823_v1 = vsel %vm822_vm8, %v974_v52, %v819_v0 }
 0x7b8   :  { %v825_v30 = vmul.f32 %v823_v1, %v791_v27 }
 0x7ba   :  { %v828_v2 = vmul.f32 %v826_v54, %v825_v30 }
 0x7bc   :  { %v831_v3 = vadd.f32 %v829_v60, %v828_v2 }
 0x7be   :  { %833 = vst.msk [vmem:[#allocation10 + $0x8] sm:$0xff] %vm106_vm0, %v831_v3 }
 0x7bf   :  { %846 = dma.vmem_to_hbm [thread:$0]  %s839_s19, 256, %s841_s20, [#allocation4], %s1104_s9, %s1104_s9, %s1105_s10  }
 0x7c0   :  { %1101 = dma.done.wait [#allocation4], 256  }
 0x7c1   :  { %1102 = vsyncadd [#allocation4], 4294967040 }
 0x7c2   :  { %851 = vsyncpa [#allocation3], 1 }
 0x7c3   :  { %852 = vsyncpa [#allocation6], 1 }
 0x7c4   :  { %853 = vsyncpa [#allocation9], 1 }
 0x7c5   :  { %854 = vsyncpa [#allocation4], 1 }

</bundles_post_ra>
